<compile_context>
chip_gen: v7x
topology: tpu7x:2x2x1
jax: 0.10.0
libtpu: 0.0.40
codegen_flags: <defaults>
</compile_context>

<pallas_src>
import numpy as np
import jax
import jax.numpy as jnp
from jax import lax
from jax.experimental import pallas as pl
from jax.experimental.pallas import tpu as pltpu

K = 7      # conv kernel size
PAD = 3    # conv "same" padding


def spatial_gate_kernel(x_ref, band_ref, b_ref, o_ref):
    # x_ref   : VMEM (NB, C, HWp)    lane-dense input tile (native dtype)
    # band_ref: VMEM (2, HWp, HWp)   conv operators [max-ch ; mean-ch] (MXU dtype)
    # b_ref   : SMEM (1,)            conv bias (f32)
    # o_ref   : VMEM (NB, C, HWp)    output tile
    xv = x_ref[...]
    mxu_dt = band_ref.dtype

    # ChannelPool over the sublane (C) axis; only the tiny pooled maps change dtype.
    p_max = jnp.max(xv, axis=1).astype(mxu_dt)                      # (NB, HWp)
    p_sum = jnp.sum(xv, axis=1, dtype=jnp.float32).astype(mxu_dt)   # (NB, HWp); 1/C folded in band
    del xv  # do not keep the big block live across the matmuls (avoid spills)

    # Conv2d(2,1,7,1,3) == two MXU contractions against the banded operators.
    acc = jnp.dot(p_max, band_ref[0], preferred_element_type=jnp.float32)
    acc = acc + jnp.dot(p_sum, band_ref[1], preferred_element_type=jnp.float32)
    acc = acc + b_ref[0]

    # ReLU -> Sigmoid -> scale, broadcast over channels; lane-dense store.
    scale = jax.nn.sigmoid(jnp.maximum(acc, 0.0))                   # (NB, HWp) f32
    # Re-read x from VMEM for the store: a fresh vld is cheap, vreg spills are not.
    o_ref[...] = (x_ref[...] * scale[:, None, :].astype(x_ref.dtype)).astype(o_ref.dtype)


def _conv_band_operator(conv_w, C, H, W, HWp, dtype):
    """Host-built dense (2, HWp, HWp) operator equivalent to Conv2d(2,1,7,1,3) applied
    to [max ; mean] pooled maps (the mean's 1/C is folded in).  Rows are flat INPUT
    positions, cols are flat OUTPUT positions; rows/cols >= H*W are zero so padded
    lanes are inert."""
    HW = H * W
    w = np.asarray(jax.device_get(conv_w), dtype=np.float32)        # (1, 2, K, K)
    idx = np.arange(HW)
    hi, wi = idx // W, idx % W
    dh = hi[:, None] - hi[None, :] + PAD
    dw = wi[:, None] - wi[None, :] + PAD
    valid = (dh >= 0) & (dh < K) & (dw >= 0) & (dw < K)
    dh_c = np.clip(dh, 0, K - 1)
    dw_c = np.clip(dw, 0, K - 1)

    def band(w2d):
        out = np.zeros((HWp, HWp), np.float32)
        out[:HW, :HW] = np.where(valid, w2d[dh_c, dw_c], 0.0)
        return out

    stacked = np.stack([band(w[0, 0]), band(w[0, 1] / C)], axis=0)  # (2, HWp, HWp)
    return jnp.asarray(stacked, dtype=dtype)


def _vmem_capacity_bytes():
    try:
        return int(pltpu.get_tpu_info().vmem_capacity_bytes)
    except Exception:
        return 64 << 20   # conservative default (v7x per-TC VMEM)


def _pick_nb(N, per_img_bytes, budget_bytes, pack):
    """Largest batch block that fits; prefer sublane-full blocks (multiple of pack),
    then an even number of grid steps (v7x megacore), then bigger blocks."""
    divs = [d for d in range(1, N + 1)
            if N % d == 0 and 4 * d * per_img_bytes <= budget_bytes]
    if not divs:
        return None
    return max(divs, key=lambda d: (d % pack == 0, (N // d) % 2 == 0, d))


def spatial_gate(x, conv_w, conv_b, *, mxu_dtype=jnp.bfloat16):
    """x: (N, C, H, W) NCHW; conv_w: (1, 2, 7, 7); conv_b: (1,).

    TODO(synk): conv weights are treated as static inference-time constants (the band
    operator is built on the host), so this wrapper is not jit-traceable over conv_w.
    """
    N, C, H, W = x.shape
    HW = H * W
    HWp = ((HW + 127) // 128) * 128                    # lane-align the spatial axis

    band = _conv_band_operator(conv_w, C, H, W, HWp, mxu_dtype)     # (2, HWp, HWp)
    bias = jnp.asarray(conv_b, jnp.float32).reshape(1)

    # Lane-dense layout: flatten spatial dims, zero-pad up to HWp.
    x_flat = x.reshape(N, C, HW)
    if HWp != HW:
        x_flat = jnp.pad(x_flat, ((0, 0), (0, 0), (0, HWp - HW)))

    # Honest VMEM budget: in/out blocks are double-buffered (2 bufs each); the band has
    # a constant index map (fetched once) but is budgeted at 2 buffers to be safe.
    vmem_cap = _vmem_capacity_bytes()
    cap = min(vmem_cap * 7 // 8, 56 << 20)             # usable ceiling, valid on v7x
    band_resident = 2 * band.size * band.dtype.itemsize
    per_img = C * HWp * x.dtype.itemsize
    x_budget = cap - band_resident - (4 << 20)         # headroom for compiler scratch
    pack = {4: 8, 2: 16, 1: 32}.get(x.dtype.itemsize, 8)

    nb = _pick_nb(N, per_img, x_budget, pack)
    if nb is None:
        # TODO(synk): fall back to the roll-based / per-kh banded conv for huge H*W.
        raise ValueError(
            f"SpatialGate block does not fit VMEM: per-image {per_img} B, band "
            f"{band_resident} B, budget {x_budget} B; H*W={HW} is too large for the "
            "dense band operator.")

    footprint = 4 * nb * per_img + band_resident
    vmem_limit = int(min(max(footprint + (8 << 20), 32 << 20), cap))

    out_flat = pl.pallas_call(
        spatial_gate_kernel,
        out_shape=jax.ShapeDtypeStruct((N, C, HWp), x.dtype),
        grid=(N // nb,),
        in_specs=[
            pl.BlockSpec((nb, C, HWp), lambda n: (n, 0, 0)),
            pl.BlockSpec((2, HWp, HWp), lambda n: (0, 0, 0)),   # constant -> stays resident
            pl.BlockSpec(memory_space=pltpu.MemorySpace.SMEM),
        ],
        out_specs=pl.BlockSpec((nb, C, HWp), lambda n: (n, 0, 0)),
        compiler_params=pltpu.CompilerParams(
            dimension_semantics=("parallel",),
            vmem_limit_bytes=vmem_limit),
    )(x_flat, band, bias)

    return out_flat[..., :HW].reshape(N, C, H, W)


def spatial_gate_reference(x, conv_w, conv_b):
    """Pure-JAX reference matching the PyTorch forward."""
    xm = jnp.max(x, axis=1, keepdims=True)
    xa = jnp.mean(x, axis=1, keepdims=True)
    xc = jnp.concatenate([xm, xa], axis=1)             # (N, 2, H, W)
    y = lax.conv_general_dilated(
        xc, conv_w, window_strides=(1, 1),
        padding=((PAD, PAD), (PAD, PAD)),
        dimension_numbers=("NCHW", "OIHW", "NCHW"))
    y = y + conv_b.reshape(1, -1, 1, 1)
    return x * jax.nn.sigmoid(jnp.maximum(y, 0.0))


if __name__ == "__main__":
    key = jax.random.PRNGKey(0)
    kx, kw, kb, kx2 = jax.random.split(key, 4)

    # Deterministic synthetic conv parameters: Conv2d(2, 1, 7) -> (1, 2, 7, 7) + (1,)
    conv_w = jax.random.normal(kw, (1, 2, K, K), dtype=jnp.float32) * 0.1
    conv_b = jax.random.normal(kb, (1,), dtype=jnp.float32) * 0.1

    # 16x16 is already lane-aligned; 14x14 exercises the HW -> 128 padding path.
    configs = (("aligned", (2, 4, 16, 16), kx),
               ("padded", (2, 8, 14, 14), kx2))
    for name, (N, C, H, W), kk in configs:
        x = jax.random.normal(kk, (N, C, H, W), dtype=jnp.float32)
        out = jax.block_until_ready(spatial_gate(x, conv_w, conv_b))
        ref = spatial_gate_reference(x, conv_w, conv_b)
        assert out.shape == ref.shape == (N, C, H, W)
        err = float(jnp.max(jnp.abs(out - ref)))
        # bf16 MXU operands (band + pooled maps) vs the all-f32 reference conv give
        # ~1e-3-level absolute error; 1e-2 is comfortably above that and far below any
        # real bug (outputs are O(1)).
        assert jnp.allclose(out, ref, rtol=1e-2, atol=1e-2), f"{name}: max abs err {err}"

    print("KERNEL_OK")
</pallas_src>

<mosaic_0001>
module attributes {stable_mosaic.version = 11 : i64} {
  func.func @spatial_gate_kernel(%arg0: i32, %arg1: memref<1x4x256xf32, #tpu.memory_space<vmem>>, %arg2: memref<2x256x256xbf16, #tpu.memory_space<vmem>>, %arg3: memref<1xf32, #tpu.memory_space<smem>>, %arg4: memref<1x4x256xf32, #tpu.memory_space<vmem>>) attributes {dimension_semantics = [#tpu.dimension_semantics<parallel>], iteration_bounds = array<i64: 2>, scalar_prefetch = 0 : i64, scratch_operands = 0 : i64, tpu.core_type = #tpu.core_type<tc>, window_params = [{transform_indices = @transform_0, window_bounds = array<i64: 1, 4, 256>}, {pipeline_mode = #tpu.pipeline_mode<synchronous>, transform_indices = @transform_1, window_bounds = array<i64: 2, 256, 256>}, {transform_indices = @transform_2, window_bounds = array<i64: 1>}, {transform_indices = @transform_3, window_bounds = array<i64: 1, 4, 256>}]} {
    %c0 = arith.constant 0 : index
    %c0_0 = arith.constant 0 : index
    %c0_1 = arith.constant 0 : index
    %0 = vector.load %arg1[%c0, %c0_0, %c0_1] : memref<1x4x256xf32, #tpu.memory_space<vmem>>, vector<1x4x256xf32>
    %cst = arith.constant dense<0xFF800000> : vector<1x256xf32>
    %1 = vector.multi_reduction <maximumf>, %0, %cst [1] : vector<1x4x256xf32> to vector<1x256xf32>
    %2 = arith.truncf %1 : vector<1x256xf32> to vector<1x256xbf16>
    %cst_2 = arith.constant dense<0.000000e+00> : vector<1x256xf32>
    %3 = vector.multi_reduction <add>, %0, %cst_2 [1] : vector<1x4x256xf32> to vector<1x256xf32>
    %4 = arith.truncf %3 : vector<1x256xf32> to vector<1x256xbf16>
    %c0_3 = arith.constant 0 : index
    %c0_4 = arith.constant 0 : index
    %c0_5 = arith.constant 0 : index
    %5 = vector.load %arg2[%c0_3, %c0_4, %c0_5] : memref<2x256x256xbf16, #tpu.memory_space<vmem>>, vector<1x256x256xbf16>
    %6 = vector.shape_cast %5 : vector<1x256x256xbf16> to vector<256x256xbf16>
    %cst_6 = arith.constant dense<0.000000e+00> : vector<1x256xf32>
    %7 = tpu.matmul %2, %6, %cst_6 {dimension_numbers = #tpu.dot_dimension_numbers<[1], [0], [0], [1], [0, 0, 1, 1], [], []>} : vector<1x256xbf16>, vector<256x256xbf16>, vector<1x256xf32> -> vector<1x256xf32>
    %c1 = arith.constant 1 : index
    %c0_7 = arith.constant 0 : index
    %c0_8 = arith.constant 0 : index
    %8 = vector.load %arg2[%c1, %c0_7, %c0_8] : memref<2x256x256xbf16, #tpu.memory_space<vmem>>, vector<1x256x256xbf16>
    %9 = vector.shape_cast %8 : vector<1x256x256xbf16> to vector<256x256xbf16>
    %cst_9 = arith.constant dense<0.000000e+00> : vector<1x256xf32>
    %10 = tpu.matmul %4, %9, %cst_9 {dimension_numbers = #tpu.dot_dimension_numbers<[1], [0], [0], [1], [0, 0, 1, 1], [], []>} : vector<1x256xbf16>, vector<256x256xbf16>, vector<1x256xf32> -> vector<1x256xf32>
    %11 = arith.addf %7, %10 : vector<1x256xf32>
    %c0_10 = arith.constant 0 : index
    %12 = memref.load %arg3[%c0_10] : memref<1xf32, #tpu.memory_space<smem>>
    %13 = vector.broadcast %12 : f32 to vector<1x256xf32>
    %14 = arith.addf %11, %13 : vector<1x256xf32>
    %cst_11 = arith.constant 0.000000e+00 : f32
    %15 = vector.broadcast %cst_11 : f32 to vector<1x256xf32>
    %16 = arith.maximumf %14, %15 : vector<1x256xf32>
    %17 = arith.negf %16 : vector<1x256xf32>
    %18 = math.exp %17 : vector<1x256xf32>
    %cst_12 = arith.constant 1.000000e+00 : f32
    %19 = vector.broadcast %cst_12 : f32 to vector<1x256xf32>
    %20 = arith.addf %19, %18 : vector<1x256xf32>
    %21 = arith.divf %19, %20 : vector<1x256xf32>
    %c0_13 = arith.constant 0 : index
    %c0_14 = arith.constant 0 : index
    %c0_15 = arith.constant 0 : index
    %22 = vector.load %arg1[%c0_13, %c0_14, %c0_15] : memref<1x4x256xf32, #tpu.memory_space<vmem>>, vector<1x4x256xf32>
    %23 = vector.shape_cast %21 : vector<1x256xf32> to vector<1x1x256xf32>
    %24 = vector.broadcast %23 : vector<1x1x256xf32> to vector<1x4x256xf32>
    %25 = arith.mulf %22, %24 : vector<1x4x256xf32>
    %c0_16 = arith.constant 0 : index
    %c0_17 = arith.constant 0 : index
    %c0_18 = arith.constant 0 : index
    %26 = vector.load %arg4[%c0_16, %c0_17, %c0_18] : memref<1x4x256xf32, #tpu.memory_space<vmem>>, vector<1x4x256xf32>
    tpu.vector_store %arg4[%c0_16, %c0_17, %c0_18], %25 {strides = array<i32>} : memref<1x4x256xf32, #tpu.memory_space<vmem>>, vector<1x4x256xf32>,
    return
  }
  func.func @transform_0(%arg0: i32) -> (i32, i32, i32) {
    %c0_i32 = arith.constant 0 : i32
    %c0_i32_0 = arith.constant 0 : i32
    %c0_i32_1 = arith.constant 0 : i32
    return %arg0, %c0_i32, %c0_i32_0 : i32, i32, i32
  }
  func.func @transform_1(%arg0: i32) -> (i32, i32, i32) {
    %c0_i32 = arith.constant 0 : i32
    %c0_i32_0 = arith.constant 0 : i32
    %c0_i32_1 = arith.constant 0 : i32
    %c0_i32_2 = arith.constant 0 : i32
    return %c0_i32, %c0_i32_0, %c0_i32_1 : i32, i32, i32
  }
  func.func @transform_2(%arg0: i32) -> i32 {
    %c0_i32 = arith.constant 0 : i32
    %c0_i32_0 = arith.constant 0 : i32
    return %c0_i32 : i32
  }
  func.func @transform_3(%arg0: i32) -> (i32, i32, i32) {
    %c0_i32 = arith.constant 0 : i32
    %c0_i32_0 = arith.constant 0 : i32
    %c0_i32_1 = arith.constant 0 : i32
    return %arg0, %c0_i32, %c0_i32_0 : i32, i32, i32
  }
}

</mosaic_0001>

<bundles_post_ra>
// kernel: tpu_custom_call.1
= control target key start
LH: loop header
LB: loop body
LE: loop exit
PB: predicated region body
PF: predicated region fallthrough
CT: control target
= control target key end

     0   :  { %s1454_s0 = inlined_call_operand.hbm [shape: f32[2,4,256], index: 0, kind: input, shape index: {}]   ;;  %s1455_s1 = inlined_call_operand.hbm [shape: bf16[2,256,256], index: 1, kind: input, shape index: {}]   ;;  %s1456_s2 = inlined_call_operand.<no memory space> [shape: f32[1], index: 2, kind: input, shape index: {}]   ;;  %s1457_s3 = inlined_call_operand.hbm [shape: f32[2,4,256], index: 3, kind: output, shape index: {}]  }
   0x1   :  { %8 = sst [smem:[#allocation2]] %s1456_s2 }
   0x2   :  { %9 = vsyncpa [#allocation4], 0 }
   0x3   :  { %11 = vsyncpa [#allocation4 + $0x1], 0 }
   0x4   :  { %12 = vsyncpa [#allocation7], 0 }
   0x5   :  { %13 = vsyncpa [#allocation5], 0 }
   0x6   :  { %15 = vsyncpa [#allocation5 + $0x1], 0  ;;  %s1240_s14 = smov 0   ;;  %s1242_s15 = smov 0  }
   0x7   :  { %s1244_s16 = smov 0   ;;  %s1246_s17 = smov 0  }
   0x8 LB: > { %s1261_s2 = sadd.s32 4294967295, %s1210_s17   ;;  %s834_s18 = sadd.s32 4294967294, %s1210_s17   ;;  %s1210_s17 = sphi %s1246_s17, %s1477_s17   ;;  %s1206_s16 = sphi %s1244_s16, %s1476_s16   ;;  %s1202_s15 = sphi %s1242_s15, %s1475_s15   ;;  %s1198_s14 = sphi %s1240_s14, %s1474_s14  }
   0x9   : > { %p41_p0 = scmp.ne.s32.totalorder %s1202_s15, %s1198_s14  ;;  %p1458_p1 = scmp.eq.s32.totalorder %s1261_s2, 0 }
   0xa   : > { %p113_p3 = scmp.eq.s32.totalorder %s834_s18, 1  ;;  %p835_p5 = scmp.ge.s32.totalorder %s1210_s17, 1 }
   0xb   : > { %p1270_p4 = por %p1458_p1, %p41_p0  ;;  %p120_p7 = scmp.lt.s32.totalorder %s1210_s17, 3 }
   0xc   : > { %p1275_p6 = por %p113_p3, %p41_p0  ;;  %s1212_s22 = smov [#allocation6]  }
   0xd   : > { %s1461_s19 = scalar_select %p1270_p4, 1, 0 }
   0xe   : > { %s1462_s20 = scalar_select %p1275_p6, 1, 0 }
   0xf   : > { %p1280_p8 = pnand %p835_p5, %p120_p7  ;;  %s132_s23 = sshll.u32 %s1212_s22, 4  ;;  %s1284_s23 = int_to_ptr.vmem [resolvable:$true] %s132_s23 }
  0x10   : > { %s1296_s25 = sadd.s32 1, %s1210_s17   ;;  %s28_s26 = sadd.s32 1, %s1206_s16 }
  0x11   : > { %s1463_s21 = scalar_select %p1280_p8, 1, 0 }
  0x12   : > { %p926_p9 = pneg %p1280_p8  ;;  %s25_s27 = ssub.s32 %s1210_s17, %s1296_s25 }
  0x13   : > { %s1082_s30 = scalar_lea.hbm %s1455_s1, 8192 }
  0x14   : > { %p1291_p11 = pnand %p926_p9, %p1458_p1  ;;  %p1083_p12 = scmp.ne.s32.totalorder %s1455_s1, %s1082_s30 }
  0x15   : > { %p1089_p5 = scmp.lt.u32.totalorder %s1082_s30, %s1455_s1 }
  0x16   : > { %p1084_p13 = pneg %p1291_p11 }
  0x18   : > { %p1085_p0 = pnand %p1084_p13, %p1083_p12 }
  0x1a   : > { %p1086_p3 = pneg %p1085_p0 }
  0x1c   : > { %p1091_p7 = pnand %p1089_p5, %p1086_p3 }
  0x1e   : > { %1094 = shalt.err (!%p1091_p7)
}
  0x1f   : > { %s1095_s8 = scalar_lea.vmem %s1284_s23, 8192  ;;  %p1103_p2 = scmp.lt.s32.totalorder %s1284_s23, %s1284_s23 }
  0x20   : > { %p1096_p9 = scmp.ne.s32.totalorder %s1284_s23, %s1095_s8  ;;  %p1104_p6 = scmp.lt.s32.totalorder %s1095_s8, %s1095_s8 }
  0x22   : > { %p1098_p10 = pnand %p1096_p9, %p1084_p13  ;;  %p1105_p4 = por %p1104_p6, %p1103_p2 }
  0x24   : > { %p1099_p1 = pneg %p1098_p10 }
  0x26   : > { %p1106_p8 = pnand %p1105_p4, %p1099_p1 }
  0x28   : > { %1109 = shalt.err (!%p1106_p8)
}
  0x29   : > { %s1213_s9 = smov 128   ;;  %s1214_s10 = smov 8  }
  0x2a   : > { %929 = dma.hbm_to_vmem [thread:$0]  (!%p1291_p11), %s1455_s1, 8192, %s1284_s23, [#allocation7], %s1213_s9, %s1213_s9, %s1214_s10  }
  0x2b   : > { %p26_p2 = scmp.eq.s32.totalorder %s25_s27, 0  ;;  %p35_p1 = scmp.ne.s32.totalorder %s1206_s16, %s1202_s15 }
  0x2c   : > { %p36_p4 = scmp.eq.s32.totalorder %s1210_s17, 0  ;;  %p939_p6 = scmp.lt.s32.totalorder %s1210_s17, 2 }
  0x2d   : > { %s1327_s13 = scalar_select %p26_p2, %s1206_s16, %s28_s26  }
  0x2e   : > { %p37_p8 = por %p36_p4, %p35_p1  ;;  %p1465_p10 = scmp.eq.s32.totalorder %s1261_s2, 1 }
  0x2f   : > { %s149_s22 = sand.u32 1, %s1206_s16   ;;  %s916_s28 = sshll.u32 %s1210_s17, 7 }
  0x30   : > { %p1331_p12 = por %p1465_p10, %p35_p1  ;;  %s838_s29 = sshll.u32 %s149_s22, 3 }
  0x31   : > { %s1340_s4 = scalar_lea.hbm %s1454_s0, %s916_s28  ;;  %s153_s23 = scalar_lea.vmem [#allocation3], %s838_s29 }
  0x32   : > { %s161_s26 = sshll.u32 %s153_s23, 4  ;;  %p1342_p11 = pnand %p939_p6, %p37_p8  ;;  %s1346_s26 = int_to_ptr.vmem [resolvable:$true] %s161_s26 }
  0x33   : > { %s150_s5 = scalar_lea.sflag [#allocation4], %s149_s22  ;;  %s1110_s6 = scalar_lea.hbm %s1340_s4, 128 }
  0x34   : > { %p1111_p13 = scmp.ne.s32.totalorder %s1340_s4, %s1110_s6  ;;  %p1112_p0 = pneg %p1342_p11 }
  0x35   : > { %s1115_s9 = scalar_lea.hbm %s1454_s0, 256  ;;  %p1116_p7 = scmp.lt.u32.totalorder %s1340_s4, %s1454_s0 }
  0x36   : > { %p1113_p3 = pnand %p1112_p0, %p1111_p13  ;;  %p1117_p9 = scmp.lt.u32.totalorder %s1115_s9, %s1110_s6 }
  0x37   : > { %p1119_p1 = scmp.lt.u32.totalorder %s1110_s6, %s1340_s4 }
  0x38   : > { %p1114_p5 = pneg %p1113_p3  ;;  %p1118_p2 = por %p1117_p9, %p1116_p7 }
  0x3a   : > { %p1120_p4 = por %p1119_p1, %p1118_p2 }
  0x3c   : > { %p1121_p6 = pnand %p1120_p4, %p1114_p5 }
  0x3e   : > { %1124 = shalt.err (!%p1121_p6)
}
  0x3f   : > { %s1125_s12 = scalar_lea.vmem %s1346_s26, 128  ;;  %s1215_s22 = smov [#allocation3]  }
  0x40   : > { %p1126_p8 = scmp.ne.s32.totalorder %s1346_s26, %s1125_s12  ;;  %s1130_s28 = sshll.u32 %s1215_s22, 4  ;;  %s1131_s28 = int_to_ptr.vmem [resolvable:$false] %s1130_s28 }
  0x41   : > { %s1132_s29 = scalar_lea.vmem %s1131_s28, 256  ;;  %p1133_p3 = scmp.lt.s32.totalorder %s1346_s26, %s1131_s28 }
  0x42   : > { %p1128_p10 = pnand %p1126_p8, %p1112_p0  ;;  %p1134_p7 = scmp.lt.s32.totalorder %s1132_s29, %s1125_s12 }
  0x44   : > { %p1129_p13 = pneg %p1128_p10  ;;  %p1135_p9 = por %p1134_p7, %p1133_p3 }
  0x46   : > { %p1136_p2 = pnand %p1135_p9, %p1129_p13 }
  0x48   : > { %1139 = shalt.err (!%p1136_p2)
}
  0x49   : > { %933 = dma.hbm_to_vmem [thread:$0]  (!%p1342_p11), %s1340_s4, 128, %s1346_s26, %s150_s5  }
  0x4a   : > { %p1468_p5 = scmp.ne.s32.totalorder %s1463_s21, 0 }
  0x4b   : > { %s1376_s24 = sand.u32 (!%p1468_p5), 1, %s1202_s15   ;;  %p1469_p0 = scmp.ne.s32.totalorder (!%p1468_p5), %s1461_s19, 0 }
  0x4c   : > { %170 = sbr.rel (%p1468_p5) target bundleno = 418 (0x1a2), region = 32  ;;  %s842_s30 = sshll.u32 (!%p1468_p5), %s1376_s24, 3 }
  0x4d   : > { %s173_s23 = scalar_lea.sflag (!%p1468_p5), [#allocation4], %s1376_s24  ;;  %s1382_s6 = scalar_lea.vmem (!%p1468_p5), [#allocation3], %s842_s30 }
  0x53   : > { %1185 = dma.done.wait (%p1469_p0), %s173_s23, 128  }
  0x54   : > { %1187 = vsyncadd (%p1469_p0), %s173_s23, 4294967168  ;;  %p1470_p11 = scmp.eq.s32.totalorder %s1261_s2, 0 }
  0x56   : > { %1189 = dma.done.wait (%p1470_p11), [#allocation7], 8192   ;;  %p1471_p1 = pmov %p1470_p11 }
  0x57   : > { %v977_v0 = vld [vmem:[#allocation6 + $0x104] ss:$8 sps:$4 sm:$0xff]   ;;  %v981_v2 = vld [vmem:[#allocation6 + $0x100] ss:$8 sps:$4 sm:$0xff]   ;;  %v983_v4 = vld [vmem:[#allocation6 + $0x114] ss:$8 sps:$4 sm:$0xff]  }
  0x58   : > { %1191 = vsyncadd (%p1471_p1), [#allocation7], 4294959104  ;;  %v979_v1 = vld [vmem:[#allocation6 + $0x4] ss:$8 sps:$4 sm:$0xff]   ;;  %465 = vmatprep.subr.bf16.mxu0 %v977_v0  ;;  %v982_v3 = vld [vmem:[#allocation6] ss:$8 sps:$4 sm:$0xff]  }
  0x59   : > { %666 = vmatprep.subr.bf16.mxu1 %v979_v1  ;;  %466 = vmatpush1.bf16.msra.mxu0 %v981_v2  ;;  %v985_v5 = vld [vmem:[#allocation6 + $0x14] ss:$8 sps:$4 sm:$0xff]   ;;  %v987_v6 = vld [vmem:[#allocation6 + $0x110] ss:$8 sps:$4 sm:$0xff]   ;;  %v989_v8 = vld [vmem:[#allocation6 + $0x124] ss:$8 sps:$4 sm:$0xff]  }
  0x5a   : > { %667 = vmatpush1.bf16.msra.mxu1 %v982_v3  ;;  %467 = vmatprep.subr.bf16.mxu0 %v983_v4  ;;  %v988_v7 = vld [vmem:[#allocation6 + $0x10] ss:$8 sps:$4 sm:$0xff]   ;;  %v991_v9 = vld [vmem:[#allocation6 + $0x24] ss:$8 sps:$4 sm:$0xff]   ;;  %v993_v10 = vld [vmem:[#allocation6 + $0x120] ss:$8 sps:$4 sm:$0xff]  }
  0x5b   : > { %668 = vmatprep.subr.bf16.mxu1 %v985_v5  ;;  %v994_v11 = vld [vmem:[#allocation6 + $0x20] ss:$8 sps:$4 sm:$0xff]   ;;  %v995_v12 = vld [vmem:[#allocation6 + $0x134] ss:$8 sps:$4 sm:$0xff]   ;;  %v999_v14 = vld [vmem:[#allocation6 + $0x130] ss:$8 sps:$4 sm:$0xff]  }
  0x5c   : > { %v997_v13 = vld [vmem:[#allocation6 + $0x34] ss:$8 sps:$4 sm:$0xff]   ;;  %v1000_v15 = vld [vmem:[#allocation6 + $0x30] ss:$8 sps:$4 sm:$0xff]   ;;  %v1001_v16 = vld [vmem:[#allocation6 + $0x144] ss:$8 sps:$4 sm:$0xff]  }
  0x5d   : > { %468 = vmatpush1.bf16.msra.mxu0 %v987_v6  ;;  %v1003_v17 = vld [vmem:[#allocation6 + $0x44] ss:$8 sps:$4 sm:$0xff]   ;;  %v1005_v18 = vld [vmem:[#allocation6 + $0x140] ss:$8 sps:$4 sm:$0xff]   ;;  %v1007_v20 = vld [vmem:[#allocation6 + $0x154] ss:$8 sps:$4 sm:$0xff]  }
  0x5e   : > { %669 = vmatpush1.bf16.msra.mxu1 %v988_v7  ;;  %469 = vmatprep.subr.bf16.mxu0 %v989_v8  ;;  %v1006_v19 = vld [vmem:[#allocation6 + $0x40] ss:$8 sps:$4 sm:$0xff]   ;;  %v1009_v21 = vld [vmem:[#allocation6 + $0x54] ss:$8 sps:$4 sm:$0xff]   ;;  %v1011_v22 = vld [vmem:[#allocation6 + $0x150] ss:$8 sps:$4 sm:$0xff]  }
  0x5f   : > { %670 = vmatprep.subr.bf16.mxu1 %v991_v9  ;;  %v1012_v23 = vld [vmem:[#allocation6 + $0x50] ss:$8 sps:$4 sm:$0xff]   ;;  %v1013_v24 = vld [vmem:[#allocation6 + $0x164] ss:$8 sps:$4 sm:$0xff]   ;;  %v1017_v26 = vld [vmem:[#allocation6 + $0x160] ss:$8 sps:$4 sm:$0xff]  }
  0x60   : > { %v1015_v25 = vld [vmem:[#allocation6 + $0x64] ss:$8 sps:$4 sm:$0xff]   ;;  %v1018_v27 = vld [vmem:[#allocation6 + $0x60] ss:$8 sps:$4 sm:$0xff]   ;;  %v1019_v28 = vld [vmem:[#allocation6 + $0x174] ss:$8 sps:$4 sm:$0xff]  }
  0x61   : > { %470 = vmatpush1.bf16.msra.mxu0 %v993_v10  ;;  %v1021_v29 = vld [vmem:[#allocation6 + $0x74] ss:$8 sps:$4 sm:$0xff]   ;;  %v1023_v30 = vld [vmem:[#allocation6 + $0x170] ss:$8 sps:$4 sm:$0xff]   ;;  %v1025_v32 = vld [vmem:[#allocation6 + $0x184] ss:$8 sps:$4 sm:$0xff]  }
  0x62   : > { %671 = vmatpush1.bf16.msra.mxu1 %v994_v11  ;;  %471 = vmatprep.subr.bf16.mxu0 %v995_v12  ;;  %v1024_v31 = vld [vmem:[#allocation6 + $0x70] ss:$8 sps:$4 sm:$0xff]   ;;  %v1027_v33 = vld [vmem:[#allocation6 + $0x84] ss:$8 sps:$4 sm:$0xff]   ;;  %v1029_v34 = vld [vmem:[#allocation6 + $0x180] ss:$8 sps:$4 sm:$0xff]  }
  0x63   : > { %672 = vmatprep.subr.bf16.mxu1 %v997_v13  ;;  %v1030_v35 = vld [vmem:[#allocation6 + $0x80] ss:$8 sps:$4 sm:$0xff]   ;;  %v1031_v36 = vld [vmem:[#allocation6 + $0x194] ss:$8 sps:$4 sm:$0xff]   ;;  %v1035_v38 = vld [vmem:[#allocation6 + $0x190] ss:$8 sps:$4 sm:$0xff]  }
  0x64   : > { %v1033_v37 = vld [vmem:[#allocation6 + $0x94] ss:$8 sps:$4 sm:$0xff]   ;;  %v1036_v39 = vld [vmem:[#allocation6 + $0x90] ss:$8 sps:$4 sm:$0xff]   ;;  %v1037_v40 = vld [vmem:[#allocation6 + $0x1a4] ss:$8 sps:$4 sm:$0xff]  }
  0x65   : > { %472 = vmatpush1.bf16.msra.mxu0 %v999_v14  ;;  %v1039_v41 = vld [vmem:[#allocation6 + $0xa4] ss:$8 sps:$4 sm:$0xff]   ;;  %v1041_v42 = vld [vmem:[#allocation6 + $0x1a0] ss:$8 sps:$4 sm:$0xff]   ;;  %v1043_v44 = vld [vmem:[#allocation6 + $0x1b4] ss:$8 sps:$4 sm:$0xff]  }
  0x66   : > { %673 = vmatpush1.bf16.msra.mxu1 %v1000_v15  ;;  %473 = vmatprep.subr.bf16.mxu0 %v1001_v16  ;;  %v1042_v43 = vld [vmem:[#allocation6 + $0xa0] ss:$8 sps:$4 sm:$0xff]   ;;  %vm207_vm0 = vcmask 1043456   ;;  %v1045_v45 = vld [vmem:[#allocation6 + $0xb4] ss:$8 sps:$4 sm:$0xff]   ;;  %s707_s19 = sld [smem:[#allocation2]] }
  0x67   : > { %674 = vmatprep.subr.bf16.mxu1 %v1003_v17  ;;  %v1393_v46 = vld [vmem:[%s1382_s6] sm:$0xff]  ;;  %v1049_v54 = vld [vmem:[#allocation6 + $0x1c4] ss:$8 sps:$4 sm:$0xff]   ;;  %v1053_v62 = vld [vmem:[#allocation6 + $0x1c0] ss:$8 sps:$4 sm:$0xff]   ;;  %s917_s21 = sshll.u32 %s1261_s2, 7 }
  0x68   : > { %v205_v47 = vcombine.high %v1393_v46, %v1393_v46  ;;  %v224_v48 = vsel %vm207_vm0, %v1393_v46, 0.0  ;;  %v208_v49 = vsel %vm207_vm0, %v1393_v46, -inf  ;;  %v1047_v50 = vld [vmem:[#allocation6 + $0x1b0] ss:$8 sps:$4 sm:$0xff]   ;;  %v1051_v55 = vld [vmem:[#allocation6 + $0xc4] ss:$8 sps:$4 sm:$0xff]   ;;  %s1410_s7 = scalar_lea.hbm %s1457_s3, %s917_s21 }
  0x69   : > { %474 = vmatpush1.bf16.msra.mxu0 %v1005_v18  ;;  %v1048_v51 = vld [vmem:[#allocation6 + $0xb0] ss:$8 sps:$4 sm:$0xff]   ;;  %v225_v52 = vrot.slane %v224_v48, 4  ;;  %v209_v53 = vrot.slane %v208_v49, 4  ;;  %v1054_v63 = vld [vmem:[#allocation6 + $0xc0] ss:$8 sps:$4 sm:$0xff]  }
  0x6a   : > { %675 = vmatpush1.bf16.msra.mxu1 %v1006_v19  ;;  %475 = vmatprep.subr.bf16.mxu0 %v1007_v20  ;;  %v231_v56 = vsel %vm207_vm0, %v205_v47, 0.0  ;;  %v215_v57 = vsel %vm207_vm0, %v205_v47, -inf  ;;  %v1055_v4 = vld [vmem:[#allocation6 + $0x1d4] ss:$8 sps:$4 sm:$0xff]   ;;  %v1059_v10 = vld [vmem:[#allocation6 + $0x1d0] ss:$8 sps:$4 sm:$0xff]  }
  0x6b   : > { %676 = vmatprep.subr.bf16.mxu1 %v1009_v21  ;;  %v232_v58 = vrot.slane %v231_v56, 4  ;;  %v216_v59 = vrot.slane %v215_v57, 4  ;;  %v226_v60 = vadd.f32 %v225_v52, %v224_v48  ;;  %v210_v61 = vmax.f32 %v208_v49, %v209_v53  ;;  %v1057_v5 = vld [vmem:[#allocation6 + $0xd4] ss:$8 sps:$4 sm:$0xff]   ;;  %v1060_v11 = vld [vmem:[#allocation6 + $0xd0] ss:$8 sps:$4 sm:$0xff]  }
  0x6c   : > { %v1061_v14 = vld [vmem:[#allocation6 + $0x1e4] ss:$8 sps:$4 sm:$0xff]   ;;  %v1065_v20 = vld [vmem:[#allocation6 + $0x1e0] ss:$8 sps:$4 sm:$0xff]   ;;  %s202_s4 = scalar_lea.vmem [#allocation8], %s842_s30  ;;  %s740_s8 = scalar_lea.sflag [#allocation5], %s1376_s24 }
  0x6d   : > { %476 = vmatpush1.bf16.msra.mxu0 %v1011_v22  ;;  %v233_v0 = vadd.f32 %v232_v58, %v231_v56  ;;  %v217_v1 = vmax.f32 %v215_v57, %v216_v59  ;;  %v227_v2 = vrot.slane %v226_v60, 2  ;;  %v211_v3 = vrot.slane %v210_v61, 2  ;;  %v1063_v15 = vld [vmem:[#allocation6 + $0xe4] ss:$8 sps:$4 sm:$0xff]   ;;  %v1066_v21 = vld [vmem:[#allocation6 + $0xe0] ss:$8 sps:$4 sm:$0xff]  }
  0x6e   : > { %677 = vmatpush1.bf16.msra.mxu1 %v1012_v23  ;;  %477 = vmatprep.subr.bf16.mxu0 %v1013_v24  ;;  %v1067_v24 = vld [vmem:[#allocation6 + $0x1f4] ss:$8 sps:$4 sm:$0xff]   ;;  %v725_v56 = vlaneseq  ;;  %s754_s26 = sshll.u32 %s202_s4, 4  ;;  %s1216_s2 = smov [#allocation8]   ;;  %s1412_s26 = int_to_ptr.vmem [resolvable:$true] %s754_s26 }
  0x6f   : > { %678 = vmatprep.subr.bf16.mxu1 %v1015_v25  ;;  %v234_v6 = vrot.slane %v233_v0, 2  ;;  %v218_v7 = vrot.slane %v217_v1, 2  ;;  %v228_v8 = vadd.f32 %v227_v2, %v226_v60  ;;  %v212_v9 = vmax.f32 %v210_v61, %v211_v3  ;;  %v1069_v25 = vld [vmem:[#allocation6 + $0xf4] ss:$8 sps:$4 sm:$0xff]   ;;  %s1140_s9 = scalar_lea.vmem %s1412_s26, 128  ;;  %s1144_s10 = sshll.u32 %s1216_s2, 4  ;;  %s1145_s10 = int_to_ptr.vmem [resolvable:$false] %s1144_s10 }
  0x70   : > { %v726_v57 = vshrl.u32 %v725_v56, 7  ;;  %p1141_p4 = scmp.ne.s32.totalorder %s1412_s26, %s1140_s9  ;;  %s1146_s11 = scalar_lea.vmem %s1145_s10, 256 }
  0x71   : > { %478 = vmatpush1.bf16.msra.mxu0 %v1017_v26  ;;  %v235_v12 = vadd.f32 %v234_v6, %v233_v0  ;;  %v219_v13 = vmax.f32 %v217_v1, %v218_v7  ;;  %v229_v18 = vrot.slane %v228_v8, 1  ;;  %v213_v19 = vrot.slane %v212_v9, 1  ;;  %p1147_p10 = scmp.lt.s32.totalorder %s1412_s26, %s1145_s10  ;;  %p1148_p13 = scmp.lt.s32.totalorder %s1146_s11, %s1140_s9 }
  0x72   : > { %679 = vmatpush1.bf16.msra.mxu1 %v1018_v27  ;;  %479 = vmatprep.subr.bf16.mxu0 %v1019_v28  ;;  %v727_v58 = vsub.s32 0, %v726_v57  ;;  %p1142_p6 = pnand %p1141_p4, %p1331_p12 }
  0x73   : > { %680 = vmatprep.subr.bf16.mxu1 %v1021_v29  ;;  %v236_v16 = vrot.slane %v235_v12, 1  ;;  %v220_v17 = vrot.slane %v219_v13, 1  ;;  %v230_v28 = vadd.f32 %v229_v18, %v228_v8  ;;  %v214_v29 = vmax.f32 %v212_v9, %v213_v19  ;;  %p1149_p3 = por %p1148_p13, %p1147_p10 }
  0x74   : > { %p1143_p8 = pneg %p1142_p6 }
  0x75   : > { %480 = vmatpush1.bf16.msra.mxu0 %v1023_v30  ;;  %v237_v22 = vadd.f32 %v236_v16, %v235_v12  ;;  %v221_v23 = vmax.f32 %v219_v13, %v220_v17  ;;  %v1071_v30 = vld [vmem:[#allocation6 + $0x1f0] ss:$8 sps:$4 sm:$0xff]  }
  0x76   : > { %681 = vmatpush1.bf16.msra.mxu1 %v1024_v31  ;;  %481 = vmatprep.subr.bf16.mxu0 %v1025_v32  ;;  %v1072_v31 = vld [vmem:[#allocation6 + $0xf0] ss:$8 sps:$4 sm:$0xff]   ;;  %v238_v32 = vpack.c.bf16 %v230_v28, %v230_v28  ;;  %p1150_p7 = pnand %p1149_p3, %p1143_p8 }
  0x77   : > { %682 = vmatprep.subr.bf16.mxu1 %v1027_v33  ;;  %v239_v26 = vpack.c.bf16 %v237_v22, %v237_v22  ;;  %v223_v27 = vpack.c.bf16 %v221_v23, %v221_v23  ;;  %v222_v33 = vpack.c.bf16 %v214_v29, %v214_v29 }
  0x79   : > { %482 = vmatpush1.bf16.msra.mxu0 %v1029_v34  ;;  %497 = vmatprep.mubr.bf16.mxu0 %v239_v26 }
  0x7a   : > { %683 = vmatpush1.bf16.msra.mxu1 %v1030_v35  ;;  %483 = vmatprep.subr.bf16.mxu0 %v1031_v36  ;;  %v708_v36 = vstv %s707_s19 }
  0x7b   : > { %684 = vmatprep.subr.bf16.mxu1 %v1033_v37  ;;  %698 = vmatprep.mubr.bf16.mxu1 %v223_v27 }
  0x7d   : > { %484 = vmatpush1.bf16.msra.mxu0 %v1035_v38 }
  0x7e   : > { %685 = vmatpush1.bf16.msra.mxu1 %v1036_v39  ;;  %485 = vmatprep.subr.bf16.mxu0 %v1037_v40 }
  0x7f   : > { %686 = vmatprep.subr.bf16.mxu1 %v1039_v41 }
  0x81   : > { %486 = vmatpush1.bf16.msra.mxu0 %v1041_v42 }
  0x82   : > { %687 = vmatpush1.bf16.msra.mxu1 %v1042_v43  ;;  %487 = vmatprep.subr.bf16.mxu0 %v1043_v44 }
  0x83   : > { %688 = vmatprep.subr.bf16.mxu1 %v1045_v45 }
  0x85   : > { %488 = vmatpush1.bf16.msra.mxu0 %v1047_v50 }
  0x86   : > { %689 = vmatpush1.bf16.msra.mxu1 %v1048_v51  ;;  %489 = vmatprep.subr.bf16.mxu0 %v1049_v54 }
  0x87   : > { %690 = vmatprep.subr.bf16.mxu1 %v1051_v55 }
  0x89   : > { %490 = vmatpush1.bf16.msra.mxu0 %v1053_v62 }
  0x8a   : > { %691 = vmatpush1.bf16.msra.mxu1 %v1054_v63  ;;  %491 = vmatprep.subr.bf16.mxu0 %v1055_v4 }
  0x8b   : > { %692 = vmatprep.subr.bf16.mxu1 %v1057_v5 }
  0x8d   : > { %492 = vmatpush1.bf16.msra.mxu0 %v1059_v10 }
  0x8e   : > { %693 = vmatpush1.bf16.msra.mxu1 %v1060_v11  ;;  %493 = vmatprep.subr.bf16.mxu0 %v1061_v14 }
  0x8f   : > { %694 = vmatprep.subr.bf16.mxu1 %v1063_v15 }
  0x91   : > { %494 = vmatpush1.bf16.msra.mxu0 %v1065_v20 }
  0x92   : > { %695 = vmatpush1.bf16.msra.mxu1 %v1066_v21  ;;  %495 = vmatprep.subr.bf16.mxu0 %v1067_v24 }
  0x93   : > { %696 = vmatprep.subr.bf16.mxu1 %v1069_v25 }
  0x95   : > { %496 = vmatpush1.bf16.msra.mxu0 %v1071_v30 }
  0x96   : > { %697 = vmatpush1.bf16.msra.mxu1 %v1072_v31 }
  0x98   : > { %498 = vmatmul.mubr.bf16.vlgmr.msra.gmra.mrb[0].mxu0 %v238_v32 }
  0x99   : > { %699 = vmatmul.mubr.bf16.vlgmr.msra.gmra.mrb[0].mxu1 %v222_v33 }
 0x16b   : > { %v499_v34 = vpop.f32.mrb[0].mxu0 }
 0x16c   : > { %v700_v35 = vpop.f32.mrb[0].mxu1  ;;  %v501_v38 = vpop.f32.mrb[1].mxu0 }
 0x16d   : > { %v701_v37 = vadd.f32 %v700_v35, %v499_v34  ;;  %v702_v39 = vpop.f32.mrb[1].mxu1  ;;  %v503_v41 = vpop.f32.mrb[2].mxu0 }
 0x16e   : > { %v703_v40 = vadd.f32 %v702_v39, %v501_v38  ;;  %v704_v42 = vpop.f32.mrb[2].mxu1  ;;  %v504_v44 = vpop.f32.mrb[3].mxu0 }
 0x16f   : > { %v709_v43 = vadd.f32 %v708_v36, %v701_v37  ;;  %v705_v45 = vpop.f32.mrb[3].mxu1 }
 0x170   : > { %v710_v47 = vadd.f32 %v708_v36, %v703_v40 }
 0x171   : > { %v711_v48 = vmax.f32 %v709_v43, 0.0 }
 0x172   : > { %v712_v49 = vmax.f32 %v710_v47, 0.0 }
 0x173   : > { %v909_v50 = vmul.f32 -1.442695, %v711_v48 }
 0x174   : > { %v910_v51 = vmul.f32 -1.442695, %v712_v49 }
 0x175   : > { %1074 = vpow2.f32 %v909_v50 }
 0x176   : > { %1076 = vpow2.f32 %v910_v51 }
 0x17f   : > { %v1075_v52 = vpop.eup %1074 }
 0x180   : > { %v1077_v53 = vpop.eup %1076  ;;  %v719_v54 = vadd.f32 1.0, %v1075_v52 }
 0x181   : > { %v720_v55 = vadd.f32 1.0, %v1077_v53 }
 0x182   : > { %1078 = vrcp.f32 %v719_v54 }
 0x183   : > { %1080 = vrcp.f32 %v720_v55 }
 0x18c   : > { %v1079_v59 = vpop.eup %1078 }
 0x18d   : > { %v1081_v60 = vpop.eup %1080  ;;  %v728_v61 = vrot.slane %v1079_v59, %v727_v58 }
 0x18e   : > { %v732_v62 = vrot.slane %v1081_v60, %v727_v58 }
 0x190   : > { %v735_v63 = vcombine.low %v728_v61, %v732_v62 }
 0x192   : > { %v737_v0 = vmul.f32 %v735_v63, %v1393_v46 }
 0x194   : > { %738 = vst [vmem:[%s202_s4] sm:$0xff] %v737_v0 }
 0x195   : > { %1153 = shalt.err (!%p1150_p7)
}
 0x196   : > { %s1154_s12 = scalar_lea.hbm %s1410_s7, 128  ;;  %s1158_s29 = scalar_lea.hbm %s1457_s3, 256 }
 0x197   : > { %p1155_p9 = scmp.ne.s32.totalorder %s1410_s7, %s1154_s12  ;;  %p1159_p0 = scmp.lt.u32.totalorder %s1410_s7, %s1457_s3 }
 0x198   : > { %p1160_p11 = scmp.lt.u32.totalorder %s1158_s29, %s1154_s12  ;;  %p1162_p4 = scmp.lt.u32.totalorder %s1154_s12, %s1410_s7 }
 0x199   : > { %p1156_p2 = pnand %p1155_p9, %p1331_p12 }
 0x19a   : > { %p1161_p1 = por %p1160_p11, %p1159_p0 }
 0x19b   : > { %p1157_p5 = pneg %p1156_p2 }
 0x19c   : > { %p1163_p6 = por %p1162_p4, %p1161_p1 }
 0x19e   : > { %p1164_p8 = pnand %p1163_p6, %p1157_p5 }
 0x1a0   : > { %1167 = shalt.err (!%p1164_p8)
}
 0x1a1   : > { %924 = dma.vmem_to_hbm [thread:$0]  (%p1331_p12), %s1412_s26, 128, %s1410_s7, %s740_s8  }
 0x1a2 PF: > { %s766_s23 = sand.u32 1, %s1198_s14   ;;  %p1472_p10 = scmp.ne.s32.totalorder %s1462_s20, 0 }
 0x1a3   : > { %p1473_p13 = scmp.ge.s32.totalorder %s1210_s17, 2  ;;  %s767_s6 = scalar_lea.sflag [#allocation5], %s766_s23 }
 0x1a5   : > { %p935_p3 = pnand %p1473_p13, %p1472_p10 }
 0x1a7   : > { %1193 = dma.done.wait (!%p935_p3), %s767_s6, 128  }
 0x1a8   : > { %1195 = vsyncadd (!%p935_p3), %s767_s6, 4294967168  ;;  %p18_p7 = scmp.ge.s32.totalorder %s1296_s25, 4   ;;  %s1474_s14 = smov %s1202_s15 }
 0x1a9   : > { %s1475_s15 = smov %s1206_s16  ;;  %s1476_s16 = smov %s1327_s13 }
 0x1aa   : > { %s1477_s17 = smov %s1296_s25  ;;  %20 = sbr.rel (!%p18_p7) target bundleno = 8 (0x8), region = 82 }
 0x1b1   :  { %772 = vsyncpa [#allocation4], 1 }
 0x1b2   :  { %774 = vsyncpa [#allocation4 + $0x1], 1 }
 0x1b3   :  { %775 = vsyncpa [#allocation7], 1 }
 0x1b4   :  { %776 = vsyncpa [#allocation5], 1 }
 0x1b5   :  { %778 = vsyncpa [#allocation5 + $0x1], 1 }

</bundles_post_ra>
